<compile_context>
chip_gen: v6e
topology: v6e:2x2x1
jax: 0.10.0
libtpu: 0.0.40
codegen_flags: <defaults>
</compile_context>

<pallas_src>
import functools

import jax
import jax.numpy as jnp
from jax.experimental import pallas as pl
from jax.experimental.pallas import tpu as pltpu


LEAKY_SLOPE = 0.01  # F.leaky_relu default negative_slope

H1, H2, H3 = 256, 256, 128
OUT_PAD = 128          # lane-dense padded width of the final (1-wide) output
B_OFFS = (0, H1, H1 + H2, H1 + H2 + H3)   # offsets of b1, b2, b3, b4 in b_all
B_ALL_W = H1 + H2 + H3 + OUT_PAD          # 768


def _lrelu(x):
    return jnp.where(x > 0, x, LEAKY_SLOPE * x)


def _round_up(x, m):
    return ((x + m - 1) // m) * m


def value_network_kernel(s_ref, a_ref,
                         w1_ref, w2s_ref, w2a_ref, w3_ref, w4p_ref,
                         b_ref,
                         o_ref):
    wdt = w1_ref.dtype  # f32 or bf16 (compute dtype of the MXU operands)

    # Static, lane-aligned views into the packed bias row (f32).
    b1 = b_ref[:, B_OFFS[0]:B_OFFS[0] + H1]
    b2 = b_ref[:, B_OFFS[1]:B_OFFS[1] + H2]
    b3 = b_ref[:, B_OFFS[2]:B_OFFS[2] + H3]
    b4 = b_ref[:, B_OFFS[3]:B_OFFS[3] + OUT_PAD]

    # fcs1: state -> 256, leaky_relu
    xs = _lrelu(
        jnp.dot(s_ref[...].astype(wdt), w1_ref[...],
                preferred_element_type=jnp.float32) + b1)

    # fc2 on concat([xs, action]) -> 256, leaky_relu.
    # xs part on the MXU; the K=action_size part as VPU broadcast-FMAs.
    acc = jnp.dot(xs.astype(wdt), w2s_ref[...],
                  preferred_element_type=jnp.float32) + b2
    a = a_ref[...]                               # (TB, A) f32
    w2a = w2a_ref[...].astype(jnp.float32)       # (A, 256) f32 for VPU adds
    for k in range(a.shape[1]):                  # A is small & static -> unrolled
        acc = acc + a[:, k:k + 1] * w2a[k:k + 1, :]
    x = _lrelu(acc)

    # fc3: 256 -> 128, leaky_relu
    x = _lrelu(
        jnp.dot(x.astype(wdt), w3_ref[...],
                preferred_element_type=jnp.float32) + b3)

    # fc4: 128 -> 1, computed lane-dense into a 128-wide padded output
    # (only column 0 of w4p / b4 is non-zero; caller slices column 0).
    o_ref[...] = (
        jnp.dot(x.astype(wdt), w4p_ref[...],
                preferred_element_type=jnp.float32) + b4)


def pack_params(params, param_dtype=jnp.float32):
    """Pack natural params into the kernel layout.

    Returns (w1, w2s, w2a, w3, w4_padded, b_all) with weights in `param_dtype`
    and the packed bias row kept in float32.
    """
    w1, b1, w2s, w2a, b2, w3, b3, w4, b4 = params
    w4p = jnp.zeros((H3, OUT_PAD), jnp.float32).at[:, 0:1].set(w4)
    b4p = jnp.zeros((1, OUT_PAD), jnp.float32).at[:, 0:1].set(b4)
    b_all = jnp.concatenate([b1, b2, b3, b4p], axis=1)        # (1, 768), f32
    cast = lambda w: w.astype(param_dtype)
    return (cast(w1), cast(w2s), cast(w2a), cast(w3), cast(w4p),
            b_all.astype(jnp.float32))


def value_network_forward(state, action, params, *, tb=512,
                          param_dtype=jnp.float32):
    """Pallas forward. state: [B, S], action: [B, A] -> Q(s, a): [B, 1]."""
    B, S = state.shape
    A = action.shape[1]
    w1, w2s, w2a, w3, w4p, b_all = pack_params(params, param_dtype)

    # Batch tile: multiple of 8 sublanes, clamped to the (padded) batch.
    tb = max(8, min(_round_up(tb, 8), _round_up(B, 8)))
    b_pad = _round_up(B, tb)
    if b_pad != B:
        pad = b_pad - B
        state = jnp.pad(state, ((0, pad), (0, 0)))
        action = jnp.pad(action, ((0, pad), (0, 0)))
    grid = (pl.cdiv(b_pad, tb),)

    # Advisory cost estimate for XLA's scheduler.
    flops = 2 * b_pad * (S * H1 + H1 * H2 + A * H2 + H2 * H3 + H3 * OUT_PAD)
    nbytes = lambda x: x.size * x.dtype.itemsize
    bytes_accessed = (nbytes(state) + nbytes(action) + nbytes(w1) + nbytes(w2s)
                      + nbytes(w2a) + nbytes(w3) + nbytes(w4p) + nbytes(b_all)
                      + b_pad * OUT_PAD * 4)

    batched = lambda i: (i, 0)     # state / action / output blocks
    resident = lambda i: (0, 0)    # weights & biases stay put across the grid

    out = pl.pallas_call(
        value_network_kernel,
        out_shape=jax.ShapeDtypeStruct((b_pad, OUT_PAD), jnp.float32),
        grid=grid,
        in_specs=[
            pl.BlockSpec((tb, S), batched),
            pl.BlockSpec((tb, A), batched),
            pl.BlockSpec(w1.shape, resident),
            pl.BlockSpec(w2s.shape, resident),
            pl.BlockSpec(w2a.shape, resident),
            pl.BlockSpec(w3.shape, resident),
            pl.BlockSpec(w4p.shape, resident),
            pl.BlockSpec(b_all.shape, resident),
        ],
        out_specs=pl.BlockSpec((tb, OUT_PAD), batched),
        compiler_params=pltpu.CompilerParams(
            dimension_semantics=("parallel",)),
        cost_estimate=pl.CostEstimate(
            flops=flops, transcendentals=0, bytes_accessed=bytes_accessed),
    )(state, action, w1, w2s, w2a, w3, w4p, b_all)

    return out[:B, :1]


def init_params(key, state_size, action_size):
    """Deterministic synthetic init mirroring ValueNetwork.reset_parameters."""
    ks = jax.random.split(key, 9)

    def uni(k, shape, lim):
        return jax.random.uniform(k, shape, jnp.float32, -lim, lim)

    lim1 = 1.0 / jnp.sqrt(float(H1))   # hidden_init uses weight.size(0) = out_features
    lim2 = 1.0 / jnp.sqrt(float(H2))
    lim3 = 1.0 / jnp.sqrt(float(H3))

    w1 = uni(ks[0], (state_size, H1), lim1)
    b1 = uni(ks[1], (1, H1), 1.0 / jnp.sqrt(float(state_size)))
    # fc2 weight split: first 256 input rows act on xs, last action_size on action
    w2s = uni(ks[2], (H1, H2), lim2)
    w2a = uni(ks[3], (action_size, H2), lim2)
    b2 = uni(ks[4], (1, H2), 1.0 / jnp.sqrt(float(H1 + action_size)))
    w3 = uni(ks[5], (H2, H3), lim3)
    b3 = uni(ks[6], (1, H3), 1.0 / jnp.sqrt(float(H2)))
    w4 = uni(ks[7], (H3, 1), 3e-3)
    b4 = uni(ks[8], (1, 1), 1.0 / jnp.sqrt(float(H3)))
    return (w1, b1, w2s, w2a, b2, w3, b3, w4, b4)


def reference_forward(state, action, params):
    """Pure-JAX reference of the PyTorch forward, for sanity checking."""
    w1, b1, w2s, w2a, b2, w3, b3, w4, b4 = params
    xs = _lrelu(state @ w1 + b1)
    x = jnp.concatenate([xs, action], axis=1)
    w2 = jnp.concatenate([w2s, w2a], axis=0)
    x = _lrelu(x @ w2 + b2)
    x = _lrelu(x @ w3 + b3)
    return x @ w4 + b4


if __name__ == "__main__":
    STATE_SIZE, ACTION_SIZE = 24, 4    # bipedal-walker-ish sizes

    key = jax.random.PRNGKey(0)
    k_s, k_a, k_p, k_s2, k_a2 = jax.random.split(key, 5)
    params = init_params(k_p, STATE_SIZE, ACTION_SIZE)

    # --- small batch, f32 weights: strict correctness check -----------------
    B = 8
    state = jax.random.normal(k_s, (B, STATE_SIZE), jnp.float32)
    action = jax.random.uniform(k_a, (B, ACTION_SIZE), jnp.float32, -1.0, 1.0)

    q = value_network_forward(state, action, params)
    q = jax.block_until_ready(q)
    q_ref = reference_forward(state, action, params)
    assert q.shape == (B, 1)
    assert jnp.allclose(q, q_ref, atol=1e-5, rtol=1e-5), "f32 mismatch vs reference"

    # --- larger, ragged batch: exercises the batch grid / tiling ------------
    B2 = 300
    state2 = jax.random.normal(k_s2, (B2, STATE_SIZE), jnp.float32)
    action2 = jax.random.uniform(k_a2, (B2, ACTION_SIZE), jnp.float32, -1.0, 1.0)
    q2 = value_network_forward(state2, action2, params, tb=128)
    q2 = jax.block_until_ready(q2)
    q2_ref = reference_forward(state2, action2, params)
    assert q2.shape == (B2, 1)
    assert jnp.allclose(q2, q2_ref, atol=1e-4, rtol=1e-4), "tiled mismatch vs reference"

    # --- bf16 weights (half the weight HBM traffic), loose check ------------
    q_bf16 = value_network_forward(state, action, params,
                                   param_dtype=jnp.bfloat16)
    q_bf16 = jax.block_until_ready(q_bf16)
    assert q_bf16.shape == (B, 1)
    assert jnp.all(jnp.isfinite(q_bf16))
    assert jnp.allclose(q_bf16, q_ref, atol=5e-2, rtol=5e-2), "bf16 path diverged"

    print("KERNEL_OK")
</pallas_src>

<mosaic_0001>
module attributes {stable_mosaic.version = 11 : i64} {
  func.func @value_network_kernel(%arg0: i32, %arg1: memref<8x24xf32, #tpu.memory_space<vmem>>, %arg2: memref<8x4xf32, #tpu.memory_space<vmem>>, %arg3: memref<24x256xf32, #tpu.memory_space<vmem>>, %arg4: memref<256x256xf32, #tpu.memory_space<vmem>>, %arg5: memref<4x256xf32, #tpu.memory_space<vmem>>, %arg6: memref<256x128xf32, #tpu.memory_space<vmem>>, %arg7: memref<128x128xf32, #tpu.memory_space<vmem>>, %arg8: memref<1x768xf32, #tpu.memory_space<vmem>>, %arg9: memref<8x128xf32, #tpu.memory_space<vmem>>) attributes {dimension_semantics = [#tpu.dimension_semantics<parallel>], iteration_bounds = array<i64: 1>, scalar_prefetch = 0 : i64, scratch_operands = 0 : i64, tpu.core_type = #tpu.core_type<tc>, window_params = [{transform_indices = @transform_0, window_bounds = array<i64: 8, 24>}, {transform_indices = @transform_1, window_bounds = array<i64: 8, 4>}, {pipeline_mode = #tpu.pipeline_mode<synchronous>, transform_indices = @transform_2, window_bounds = array<i64: 24, 256>}, {pipeline_mode = #tpu.pipeline_mode<synchronous>, transform_indices = @transform_3, window_bounds = array<i64: 256, 256>}, {pipeline_mode = #tpu.pipeline_mode<synchronous>, transform_indices = @transform_4, window_bounds = array<i64: 4, 256>}, {pipeline_mode = #tpu.pipeline_mode<synchronous>, transform_indices = @transform_5, window_bounds = array<i64: 256, 128>}, {pipeline_mode = #tpu.pipeline_mode<synchronous>, transform_indices = @transform_6, window_bounds = array<i64: 128, 128>}, {pipeline_mode = #tpu.pipeline_mode<synchronous>, transform_indices = @transform_7, window_bounds = array<i64: 1, 768>}, {transform_indices = @transform_8, window_bounds = array<i64: 8, 128>}]} {
    %c0 = arith.constant 0 : index
    %c0_0 = arith.constant 0 : index
    %0 = vector.load %arg8[%c0, %c0_0] : memref<1x768xf32, #tpu.memory_space<vmem>>, vector<1x256xf32>
    %c0_1 = arith.constant 0 : index
    %c256 = arith.constant 256 : index
    %1 = vector.load %arg8[%c0_1, %c256] : memref<1x768xf32, #tpu.memory_space<vmem>>, vector<1x256xf32>
    %c0_2 = arith.constant 0 : index
    %c512 = arith.constant 512 : index
    %2 = vector.load %arg8[%c0_2, %c512] : memref<1x768xf32, #tpu.memory_space<vmem>>, vector<1x128xf32>
    %c0_3 = arith.constant 0 : index
    %c640 = arith.constant 640 : index
    %3 = vector.load %arg8[%c0_3, %c640] : memref<1x768xf32, #tpu.memory_space<vmem>>, vector<1x128xf32>
    %c0_4 = arith.constant 0 : index
    %c0_5 = arith.constant 0 : index
    %4 = vector.load %arg1[%c0_4, %c0_5] : memref<8x24xf32, #tpu.memory_space<vmem>>, vector<8x24xf32>
    %c0_6 = arith.constant 0 : index
    %c0_7 = arith.constant 0 : index
    %5 = vector.load %arg3[%c0_6, %c0_7] : memref<24x256xf32, #tpu.memory_space<vmem>>, vector<24x256xf32>
    %cst = arith.constant dense<0.000000e+00> : vector<8x256xf32>
    %6 = tpu.matmul %4, %5, %cst {dimension_numbers = #tpu.dot_dimension_numbers<[1], [0], [0], [1], [0, 0, 1, 1], [], []>} : vector<8x24xf32>, vector<24x256xf32>, vector<8x256xf32> -> vector<8x256xf32>
    %7 = vector.broadcast %0 : vector<1x256xf32> to vector<8x256xf32>
    %8 = arith.addf %6, %7 : vector<8x256xf32>
    %cst_8 = arith.constant 0.000000e+00 : f32
    %9 = vector.broadcast %cst_8 : f32 to vector<8x256xf32>
    %10 = arith.cmpf ogt, %8, %9 : vector<8x256xf32>
    %cst_9 = arith.constant 0.00999999977 : f32
    %11 = vector.broadcast %cst_9 : f32 to vector<8x256xf32>
    %12 = arith.mulf %11, %8 : vector<8x256xf32>
    %13 = arith.select %10, %8, %12 : vector<8x256xi1>, vector<8x256xf32>
    %c0_10 = arith.constant 0 : index
    %c0_11 = arith.constant 0 : index
    %14 = vector.load %arg4[%c0_10, %c0_11] : memref<256x256xf32, #tpu.memory_space<vmem>>, vector<256x256xf32>
    %cst_12 = arith.constant dense<0.000000e+00> : vector<8x256xf32>
    %15 = tpu.matmul %13, %14, %cst_12 {dimension_numbers = #tpu.dot_dimension_numbers<[1], [0], [0], [1], [0, 0, 1, 1], [], []>} : vector<8x256xf32>, vector<256x256xf32>, vector<8x256xf32> -> vector<8x256xf32>
    %16 = vector.broadcast %1 : vector<1x256xf32> to vector<8x256xf32>
    %17 = arith.addf %15, %16 : vector<8x256xf32>
    %c0_13 = arith.constant 0 : index
    %c0_14 = arith.constant 0 : index
    %18 = vector.load %arg2[%c0_13, %c0_14] : memref<8x4xf32, #tpu.memory_space<vmem>>, vector<8x4xf32>
    %c0_15 = arith.constant 0 : index
    %c0_16 = arith.constant 0 : index
    %19 = vector.load %arg5[%c0_15, %c0_16] : memref<4x256xf32, #tpu.memory_space<vmem>>, vector<4x256xf32>
    %20 = vector.extract_strided_slice %18 {offsets = [0, 0], sizes = [8, 1], strides = [1, 1]} : vector<8x4xf32> to vector<8x1xf32>
    %21 = vector.extract_strided_slice %19 {offsets = [0, 0], sizes = [1, 256], strides = [1, 1]} : vector<4x256xf32> to vector<1x256xf32>
    %22 = vector.broadcast %20 : vector<8x1xf32> to vector<8x256xf32>
    %23 = vector.broadcast %21 : vector<1x256xf32> to vector<8x256xf32>
    %24 = arith.mulf %22, %23 : vector<8x256xf32>
    %25 = arith.addf %17, %24 : vector<8x256xf32>
    %26 = vector.extract_strided_slice %18 {offsets = [0, 1], sizes = [8, 1], strides = [1, 1]} : vector<8x4xf32> to vector<8x1xf32>
    %27 = vector.extract_strided_slice %19 {offsets = [1, 0], sizes = [1, 256], strides = [1, 1]} : vector<4x256xf32> to vector<1x256xf32>
    %28 = vector.broadcast %26 : vector<8x1xf32> to vector<8x256xf32>
    %29 = vector.broadcast %27 : vector<1x256xf32> to vector<8x256xf32>
    %30 = arith.mulf %28, %29 : vector<8x256xf32>
    %31 = arith.addf %25, %30 : vector<8x256xf32>
    %32 = vector.extract_strided_slice %18 {offsets = [0, 2], sizes = [8, 1], strides = [1, 1]} : vector<8x4xf32> to vector<8x1xf32>
    %33 = vector.extract_strided_slice %19 {offsets = [2, 0], sizes = [1, 256], strides = [1, 1]} : vector<4x256xf32> to vector<1x256xf32>
    %34 = vector.broadcast %32 : vector<8x1xf32> to vector<8x256xf32>
    %35 = vector.broadcast %33 : vector<1x256xf32> to vector<8x256xf32>
    %36 = arith.mulf %34, %35 : vector<8x256xf32>
    %37 = arith.addf %31, %36 : vector<8x256xf32>
    %38 = vector.extract_strided_slice %18 {offsets = [0, 3], sizes = [8, 1], strides = [1, 1]} : vector<8x4xf32> to vector<8x1xf32>
    %39 = vector.extract_strided_slice %19 {offsets = [3, 0], sizes = [1, 256], strides = [1, 1]} : vector<4x256xf32> to vector<1x256xf32>
    %40 = vector.broadcast %38 : vector<8x1xf32> to vector<8x256xf32>
    %41 = vector.broadcast %39 : vector<1x256xf32> to vector<8x256xf32>
    %42 = arith.mulf %40, %41 : vector<8x256xf32>
    %43 = arith.addf %37, %42 : vector<8x256xf32>
    %cst_17 = arith.constant 0.000000e+00 : f32
    %44 = vector.broadcast %cst_17 : f32 to vector<8x256xf32>
    %45 = arith.cmpf ogt, %43, %44 : vector<8x256xf32>
    %cst_18 = arith.constant 0.00999999977 : f32
    %46 = vector.broadcast %cst_18 : f32 to vector<8x256xf32>
    %47 = arith.mulf %46, %43 : vector<8x256xf32>
    %48 = arith.select %45, %43, %47 : vector<8x256xi1>, vector<8x256xf32>
    %c0_19 = arith.constant 0 : index
    %c0_20 = arith.constant 0 : index
    %49 = vector.load %arg6[%c0_19, %c0_20] : memref<256x128xf32, #tpu.memory_space<vmem>>, vector<256x128xf32>
    %cst_21 = arith.constant dense<0.000000e+00> : vector<8x128xf32>
    %50 = tpu.matmul %48, %49, %cst_21 {dimension_numbers = #tpu.dot_dimension_numbers<[1], [0], [0], [1], [0, 0, 1, 1], [], []>} : vector<8x256xf32>, vector<256x128xf32>, vector<8x128xf32> -> vector<8x128xf32>
    %51 = vector.broadcast %2 : vector<1x128xf32> to vector<8x128xf32>
    %52 = arith.addf %50, %51 : vector<8x128xf32>
    %cst_22 = arith.constant 0.000000e+00 : f32
    %53 = vector.broadcast %cst_22 : f32 to vector<8x128xf32>
    %54 = arith.cmpf ogt, %52, %53 : vector<8x128xf32>
    %cst_23 = arith.constant 0.00999999977 : f32
    %55 = vector.broadcast %cst_23 : f32 to vector<8x128xf32>
    %56 = arith.mulf %55, %52 : vector<8x128xf32>
    %57 = arith.select %54, %52, %56 : vector<8x128xi1>, vector<8x128xf32>
    %c0_24 = arith.constant 0 : index
    %c0_25 = arith.constant 0 : index
    %58 = vector.load %arg7[%c0_24, %c0_25] : memref<128x128xf32, #tpu.memory_space<vmem>>, vector<128x128xf32>
    %cst_26 = arith.constant dense<0.000000e+00> : vector<8x128xf32>
    %59 = tpu.matmul %57, %58, %cst_26 {dimension_numbers = #tpu.dot_dimension_numbers<[1], [0], [0], [1], [0, 0, 1, 1], [], []>} : vector<8x128xf32>, vector<128x128xf32>, vector<8x128xf32> -> vector<8x128xf32>
    %60 = vector.broadcast %3 : vector<1x128xf32> to vector<8x128xf32>
    %61 = arith.addf %59, %60 : vector<8x128xf32>
    %c0_27 = arith.constant 0 : index
    %c0_28 = arith.constant 0 : index
    %62 = vector.load %arg9[%c0_27, %c0_28] : memref<8x128xf32, #tpu.memory_space<vmem>>, vector<8x128xf32>
    tpu.vector_store %arg9[%c0_27, %c0_28], %61 {strides = array<i32>} : memref<8x128xf32, #tpu.memory_space<vmem>>, vector<8x128xf32>,
    return
  }
  func.func @transform_0(%arg0: i32) -> (i32, i32) {
    %c0_i32 = arith.constant 0 : i32
    %c0_i32_0 = arith.constant 0 : i32
    return %arg0, %c0_i32 : i32, i32
  }
  func.func @transform_1(%arg0: i32) -> (i32, i32) {
    %c0_i32 = arith.constant 0 : i32
    %c0_i32_0 = arith.constant 0 : i32
    return %arg0, %c0_i32 : i32, i32
  }
  func.func @transform_2(%arg0: i32) -> (i32, i32) {
    %c0_i32 = arith.constant 0 : i32
    %c0_i32_0 = arith.constant 0 : i32
    %c0_i32_1 = arith.constant 0 : i32
    return %c0_i32, %c0_i32_0 : i32, i32
  }
  func.func @transform_3(%arg0: i32) -> (i32, i32) {
    %c0_i32 = arith.constant 0 : i32
    %c0_i32_0 = arith.constant 0 : i32
    %c0_i32_1 = arith.constant 0 : i32
    return %c0_i32, %c0_i32_0 : i32, i32
  }
  func.func @transform_4(%arg0: i32) -> (i32, i32) {
    %c0_i32 = arith.constant 0 : i32
    %c0_i32_0 = arith.constant 0 : i32
    %c0_i32_1 = arith.constant 0 : i32
    return %c0_i32, %c0_i32_0 : i32, i32
  }
  func.func @transform_5(%arg0: i32) -> (i32, i32) {
    %c0_i32 = arith.constant 0 : i32
    %c0_i32_0 = arith.constant 0 : i32
    %c0_i32_1 = arith.constant 0 : i32
    return %c0_i32, %c0_i32_0 : i32, i32
  }
  func.func @transform_6(%arg0: i32) -> (i32, i32) {
    %c0_i32 = arith.constant 0 : i32
    %c0_i32_0 = arith.constant 0 : i32
    %c0_i32_1 = arith.constant 0 : i32
    return %c0_i32, %c0_i32_0 : i32, i32
  }
  func.func @transform_7(%arg0: i32) -> (i32, i32) {
    %c0_i32 = arith.constant 0 : i32
    %c0_i32_0 = arith.constant 0 : i32
    %c0_i32_1 = arith.constant 0 : i32
    return %c0_i32, %c0_i32_0 : i32, i32
  }
  func.func @transform_8(%arg0: i32) -> (i32, i32) {
    %c0_i32 = arith.constant 0 : i32
    %c0_i32_0 = arith.constant 0 : i32
    return %arg0, %c0_i32 : i32, i32
  }
}

</mosaic_0001>

<bundles_post_ra>
// kernel: tpu_custom_call.1
= control target key start
LH: loop header
LB: loop body
LE: loop exit
PB: predicated region body
PF: predicated region fallthrough
CT: control target
= control target key end

     0   :  { %13 = vsyncpa [#allocation3], 0  ;;  %s1025_s0 = inlined_call_operand.vmem [shape: f32[8,24], index: 0, kind: input, shape index: {}]   ;;  %s1026_s1 = inlined_call_operand.vmem [shape: f32[8,4], index: 1, kind: input, shape index: {}]   ;;  %s1027_s2 = inlined_call_operand.hbm [shape: f32[24,256], index: 2, kind: input, shape index: {}]   ;;  %s1028_s3 = inlined_call_operand.hbm [shape: f32[256,256], index: 3, kind: input, shape index: {}]   ;;  %s1029_s4 = inlined_call_operand.vmem [shape: f32[4,256], index: 4, kind: input, shape index: {}]   ;;  %s1030_s5 = inlined_call_operand.hbm [shape: f32[256,128], index: 5, kind: input, shape index: {}]   ;;  %s1031_s6 = inlined_call_operand.hbm [shape: f32[128,128], index: 6, kind: input, shape index: {}]   ;;  %s1032_s7 = inlined_call_operand.vmem [shape: f32[1,768], index: 7, kind: input, shape index: {}]   ;;  %s1033_s8 = inlined_call_operand.hbm [shape: f32[8,128], index: 8, kind: output, shape index: {}]  }
   0x1   :  { %14 = vsyncpa [#allocation6], 0 }
   0x2   :  { %15 = vsyncpa [#allocation9], 0 }
   0x3   :  { %16 = vsyncpa [#allocation4], 0  ;;  %s887_s27 = smov [#allocation5]   ;;  %s888_s29 = smov [#allocation2]  }
   0x4   :  { %s38_s28 = sshll.u32 %s887_s27, 4  ;;  %s26_s30 = sshll.u32 %s888_s29, 4  ;;  %s39_s28 = int_to_ptr.vmem [resolvable:$true] %s38_s28  ;;  %s27_s30 = int_to_ptr.vmem [resolvable:$true] %s26_s30 }
   0x5   :  { %s787_s9 = scalar_lea.vmem %s39_s28, 8192  ;;  %p792_p1 = scmp.lt.s32.totalorder %s39_s28, %s39_s28 }
   0x6   :  { %p788_p0 = scmp.ne.s32.totalorder %s39_s28, %s787_s9  ;;  %p793_p2 = scmp.lt.s32.totalorder %s787_s9, %s787_s9 }
   0x8   :  { %p794_p3 = por %p793_p2, %p792_p1 }
   0xa   :  { %p795_p4 = pnand %p794_p3, %p788_p0 }
   0xc   :  { %798 = shalt.err (!%p795_p4)
}
   0xd   :  { %s889_s10 = smov 256   ;;  %s890_s11 = smov 16  }
   0xe   :  { %44 = dma.hbm_to_vmem [thread:$0]  %s1028_s3, 8192, %s39_s28, [#allocation6], %s889_s10, %s889_s10, %s890_s11  }
   0xf   :  { %s807_s14 = scalar_lea.vmem %s27_s30, 768  ;;  %p812_p6 = scmp.lt.s32.totalorder %s27_s30, %s27_s30 }
  0x10   :  { %p808_p5 = scmp.ne.s32.totalorder %s27_s30, %s807_s14  ;;  %p813_p7 = scmp.lt.s32.totalorder %s807_s14, %s807_s14 }
  0x12   :  { %p814_p8 = por %p813_p7, %p812_p6 }
  0x14   :  { %p815_p9 = pnand %p814_p8, %p808_p5 }
  0x16   :  { %818 = shalt.err (!%p815_p9)
}
  0x17   :  { %32 = dma.hbm_to_vmem [thread:$0]  %s1027_s2, 768, %s27_s30, [#allocation3], %s889_s10, %s889_s10, %s890_s11  }
  0x18   :  { %s891_s17 = smov [#allocation7]  }
  0x19   :  { %s52_s18 = sshll.u32 %s891_s17, 4  ;;  %s53_s18 = int_to_ptr.vmem [resolvable:$true] %s52_s18 }
  0x1a   :  { %s827_s19 = scalar_lea.vmem %s53_s18, 4096  ;;  %p832_p11 = scmp.lt.s32.totalorder %s53_s18, %s53_s18 }
  0x1b   :  { %p828_p10 = scmp.ne.s32.totalorder %s53_s18, %s827_s19  ;;  %p833_p12 = scmp.lt.s32.totalorder %s827_s19, %s827_s19 }
  0x1d   :  { %p834_p13 = por %p833_p12, %p832_p11 }
  0x1f   :  { %p835_p0 = pnand %p834_p13, %p828_p10 }
  0x21   :  { %838 = shalt.err (!%p835_p0)
}
  0x22   :  { %s892_s3 = smov 128   ;;  %s893_s20 = smov 8  }
  0x23   :  { %58 = dma.hbm_to_vmem [thread:$0]  %s1030_s5, 4096, %s53_s18, [#allocation6], %s892_s3, %s892_s3, %s893_s20  }
  0x24   :  { %s894_s23 = smov [#allocation8]  }
  0x25   :  { %s64_s24 = sshll.u32 %s894_s23, 4  ;;  %s65_s24 = int_to_ptr.vmem [resolvable:$true] %s64_s24 }
  0x26   :  { %s847_s2 = scalar_lea.vmem %s65_s24, 2048  ;;  %p852_p2 = scmp.lt.s32.totalorder %s65_s24, %s65_s24 }
  0x27   :  { %p848_p1 = scmp.ne.s32.totalorder %s65_s24, %s847_s2  ;;  %p853_p3 = scmp.lt.s32.totalorder %s847_s2, %s847_s2 }
  0x29   :  { %p854_p4 = por %p853_p3, %p852_p2 }
  0x2b   :  { %p855_p5 = pnand %p854_p4, %p848_p1 }
  0x2d   :  { %858 = shalt.err (!%p855_p5)
}
  0x2e   :  { %70 = dma.hbm_to_vmem [thread:$0]  %s1031_s6, 2048, %s65_s24, [#allocation9], %s892_s3, %s892_s3, %s893_s20  }
  0x2f   :  { %879 = dma.done.wait [#allocation3], 768  }
  0x30   :  { %880 = vsyncadd [#allocation3], 4294966528 }
  0x31   :  { %881 = dma.done.wait [#allocation6], 12288  }
  0x32   :  { %882 = vsyncadd [#allocation6], 4294955008 }
  0x33   :  { %883 = dma.done.wait [#allocation9], 2048  }
  0x34   :  { %884 = vsyncadd [#allocation9], 4294965248  ;;  %v895_v0 = vmov 0.0   ;;  %v95_v1 = vld [vmem:[#allocation2 + $0x28] sm:$0xff]  ;;  %v94_v2 = vld [vmem:[#allocation2 + $0x20] sm:$0xff]  ;;  %vm107_vm0 = vcmask 195584  }
  0x35   :  { %175 = vmatprep.mubr.f32.mxu0 %v895_v0  ;;  %v93_v3 = vld [vmem:[#allocation2 + $0x18] sm:$0xff]  ;;  %137 = vmatprep.subr.mxu0 %v95_v1  ;;  %v92_v4 = vld [vmem:[#allocation2 + $0x10] sm:$0xff]  ;;  %v91_v5 = vld [vmem:[#allocation2 + $0x8] sm:$0xff]  ;;  %vm900_vm5 = vmmov 0   ;;  %s901_s14 = smov [#allocation10]  }
  0x36   :  { %138 = vmatpush1.msra.mxu0 %v94_v2  ;;  %v219_v6 = vld [vmem:[#allocation5 + $0xf8] sm:$0xff]  ;;  %v218_v7 = vld [vmem:[#allocation5 + $0xf0] sm:$0xff]  ;;  %v217_v9 = vld [vmem:[#allocation5 + $0xe8] sm:$0xff]  ;;  %s658_s15 = sshll.u32 %s901_s14, 4  ;;  %s659_s15 = int_to_ptr.vmem [resolvable:$true] %s658_s15 }
  0x37   :  { %139 = vmatprep.subr.mxu0 %v93_v3  ;;  %v90_v8 = vld [vmem:[#allocation2] sm:$0xff]  ;;  %263 = vmatprep.subr.mxu1 %v219_v6  ;;  %v216_v10 = vld [vmem:[#allocation5 + $0xe0] sm:$0xff]  ;;  %v215_v12 = vld [vmem:[#allocation5 + $0xd8] sm:$0xff]  ;;  %s859_s16 = scalar_lea.vmem %s659_s15, 128  ;;  %p864_p7 = scmp.lt.s32.totalorder %s659_s15, %s659_s15 }
  0x38   :  { %140 = vmatpush1.msra.mxu0 %v92_v4  ;;  %v89_v11 = vld [vmem:[%s1025_s0] sm:$0xff]  ;;  %264 = vmatpush1.msra.mxu1 %v218_v7  ;;  %v213_v14 = vld [vmem:[#allocation5 + $0xc8] sm:$0xff]  ;;  %v212_v15 = vld [vmem:[#allocation5 + $0xc0] sm:$0xff]  ;;  %p860_p6 = scmp.ne.s32.totalorder %s659_s15, %s859_s16  ;;  %p865_p8 = scmp.lt.s32.totalorder %s859_s16, %s859_s16 }
  0x39   :  { %141 = vmatprep.subr.mxu0 %v91_v5  ;;  %265 = vmatprep.subr.mxu1 %v217_v9  ;;  %v214_v13 = vld [vmem:[#allocation5 + $0xd0] sm:$0xff]  ;;  %v211_v16 = vld [vmem:[#allocation5 + $0xb8] sm:$0xff]  ;;  %v209_v18 = vld [vmem:[#allocation5 + $0xa8] sm:$0xff] }
  0x3a   :  { %142 = vmatpush1.msra.mxu0 %v90_v8  ;;  %266 = vmatpush1.msra.mxu1 %v216_v10  ;;  %v210_v17 = vld [vmem:[#allocation5 + $0xb0] sm:$0xff]  ;;  %v208_v19 = vld [vmem:[#allocation5 + $0xa0] sm:$0xff]  ;;  %v207_v20 = vld [vmem:[#allocation5 + $0x98] sm:$0xff]  ;;  %p866_p9 = por %p865_p8, %p864_p7 }
  0x3b   :  { %669 = vmatmul.mubr.msk.f32.vlgmr.msra.gmra.mxu0 %vm107_vm0, %v89_v11  ;;  %267 = vmatprep.subr.mxu1 %v215_v12  ;;  %v206_v21 = vld [vmem:[#allocation5 + $0x90] sm:$0xff]  ;;  %v205_v22 = vld [vmem:[#allocation5 + $0x88] sm:$0xff]  ;;  %v204_v23 = vld [vmem:[#allocation5 + $0x80] sm:$0xff]  ;;  %v896_v11 = vmov 0   ;;  %v897_v12 = vmov 2  }
  0x3c   :  { %268 = vmatpush1.msra.mxu1 %v214_v13  ;;  %v203_v24 = vld [vmem:[#allocation5 + $0x78] sm:$0xff]  ;;  %v202_v25 = vld [vmem:[#allocation5 + $0x70] sm:$0xff]  ;;  %v201_v26 = vld [vmem:[#allocation5 + $0x68] sm:$0xff]  ;;  %774 = vset.pattern.permute.xlu0 %v896_v11  ;;  %p867_p10 = pnand %p866_p9, %p860_p6 }
  0x3d   :  { %269 = vmatprep.subr.mxu1 %v213_v14  ;;  %v200_v27 = vld [vmem:[#allocation5 + $0x60] sm:$0xff]  ;;  %v199_v28 = vld [vmem:[#allocation5 + $0x58] sm:$0xff]  ;;  %v198_v29 = vld [vmem:[#allocation5 + $0x50] sm:$0xff]  ;;  %776 = vset.pattern.permute.xlu1 %v897_v12 }
  0x3e   :  { %270 = vmatpush1.msra.mxu1 %v212_v15  ;;  %v197_v30 = vld [vmem:[#allocation5 + $0x48] sm:$0xff]  ;;  %v196_v31 = vld [vmem:[#allocation5 + $0x40] sm:$0xff]  ;;  %v195_v32 = vld [vmem:[#allocation5 + $0x38] sm:$0xff] }
  0x3f   :  { %271 = vmatprep.subr.mxu1 %v211_v16  ;;  %v194_v33 = vld [vmem:[#allocation5 + $0x30] sm:$0xff]  ;;  %v193_v34 = vld [vmem:[#allocation5 + $0x28] sm:$0xff]  ;;  %v192_v35 = vld [vmem:[#allocation5 + $0x20] sm:$0xff]  ;;  %v898_v16 = vmov 1  }
  0x40   :  { %272 = vmatpush1.msra.mxu1 %v210_v17  ;;  %v191_v36 = vld [vmem:[#allocation5 + $0x18] sm:$0xff]  ;;  %v190_v37 = vld [vmem:[#allocation5 + $0x10] sm:$0xff]  ;;  %v189_v38 = vld [vmem:[#allocation5 + $0x8] sm:$0xff]  ;;  %v899_v17 = vmov 3  }
  0x41   :  { %273 = vmatprep.subr.mxu1 %v209_v18  ;;  %v188_v39 = vld [vmem:[#allocation5] sm:$0xff]  ;;  %v251_v40 = vld [vmem:[#allocation5 + $0x1f8] sm:$0xff]  ;;  %v250_v41 = vld [vmem:[#allocation5 + $0x1f0] sm:$0xff] }
  0x42   :  { %274 = vmatpush1.msra.mxu1 %v208_v19  ;;  %v249_v42 = vld [vmem:[#allocation5 + $0x1e8] sm:$0xff]  ;;  %v248_v43 = vld [vmem:[#allocation5 + $0x1e0] sm:$0xff]  ;;  %v247_v44 = vld [vmem:[#allocation5 + $0x1d8] sm:$0xff] }
  0x43   :  { %275 = vmatprep.subr.mxu1 %v207_v20  ;;  %v246_v45 = vld [vmem:[#allocation5 + $0x1d0] sm:$0xff]  ;;  %v245_v46 = vld [vmem:[#allocation5 + $0x1c8] sm:$0xff]  ;;  %v244_v47 = vld [vmem:[#allocation5 + $0x1c0] sm:$0xff] }
  0x44   :  { %276 = vmatpush1.msra.mxu1 %v206_v21  ;;  %v243_v48 = vld [vmem:[#allocation5 + $0x1b8] sm:$0xff]  ;;  %v242_v49 = vld [vmem:[#allocation5 + $0x1b0] sm:$0xff]  ;;  %v241_v50 = vld [vmem:[#allocation5 + $0x1a8] sm:$0xff] }
  0x45   :  { %277 = vmatprep.subr.mxu1 %v205_v22  ;;  %v240_v51 = vld [vmem:[#allocation5 + $0x1a0] sm:$0xff]  ;;  %v239_v52 = vld [vmem:[#allocation5 + $0x198] sm:$0xff]  ;;  %v238_v53 = vld [vmem:[#allocation5 + $0x190] sm:$0xff] }
  0x46   :  { %278 = vmatpush1.msra.mxu1 %v204_v23  ;;  %v237_v54 = vld [vmem:[#allocation5 + $0x188] sm:$0xff]  ;;  %v236_v55 = vld [vmem:[#allocation5 + $0x180] sm:$0xff]  ;;  %v235_v56 = vld [vmem:[#allocation5 + $0x178] sm:$0xff] }
  0x47   :  { %279 = vmatprep.subr.mxu1 %v203_v24  ;;  %v234_v57 = vld [vmem:[#allocation5 + $0x170] sm:$0xff]  ;;  %v233_v58 = vld [vmem:[#allocation5 + $0x168] sm:$0xff]  ;;  %v232_v59 = vld [vmem:[#allocation5 + $0x160] sm:$0xff] }
  0x48   :  { %280 = vmatpush1.msra.mxu1 %v202_v25  ;;  %v231_v60 = vld [vmem:[#allocation5 + $0x158] sm:$0xff]  ;;  %v230_v61 = vld [vmem:[#allocation5 + $0x150] sm:$0xff]  ;;  %v229_v62 = vld [vmem:[#allocation5 + $0x148] sm:$0xff] }
  0x49   :  { %281 = vmatprep.subr.mxu1 %v201_v26  ;;  %v228_v63 = vld [vmem:[#allocation5 + $0x140] sm:$0xff]  ;;  %v227_v1 = vld [vmem:[#allocation5 + $0x138] sm:$0xff]  ;;  %v226_v2 = vld [vmem:[#allocation5 + $0x130] sm:$0xff] }
  0x4a   :  { %282 = vmatpush1.msra.mxu1 %v200_v27  ;;  %v225_v3 = vld [vmem:[#allocation5 + $0x128] sm:$0xff]  ;;  %v224_v4 = vld [vmem:[#allocation5 + $0x120] sm:$0xff]  ;;  %v223_v5 = vld [vmem:[#allocation5 + $0x118] sm:$0xff] }
  0x4b   :  { %283 = vmatprep.subr.mxu1 %v199_v28  ;;  %v222_v6 = vld [vmem:[#allocation5 + $0x110] sm:$0xff]  ;;  %v221_v7 = vld [vmem:[#allocation5 + $0x108] sm:$0xff]  ;;  %v220_v8 = vld [vmem:[#allocation5 + $0x100] sm:$0xff] }
  0x4c   :  { %284 = vmatpush1.msra.mxu1 %v198_v29  ;;  %v334_v9 = vld [vmem:[%s1026_s1] sm:$0xff]  ;;  %v479_v10 = vld [vmem:[#allocation7 + $0xf8] sm:$0xff]  ;;  %v477_v18 = vld [vmem:[#allocation7 + $0xe8] sm:$0xff]  ;;  %v97_v29 = vlaneseq }
  0x4d   :  { %285 = vmatprep.subr.mxu1 %v197_v30  ;;  %v463_v13 = vld [vmem:[#allocation7 + $0x78] sm:$0xff]  ;;  %338 = vperm.xlu0 %774, %v334_v9   ;;  %v478_v14 = vld [vmem:[#allocation7 + $0xf0] sm:$0xff]  ;;  %v461_v19 = vld [vmem:[#allocation7 + $0x68] sm:$0xff] }
  0x4e   :  { %286 = vmatpush1.msra.mxu1 %v196_v31  ;;  %391 = vperm.xlu1 %776, %v334_v9   ;;  %v462_v15 = vld [vmem:[#allocation7 + $0x70] sm:$0xff]  ;;  %v476_v20 = vld [vmem:[#allocation7 + $0xe0] sm:$0xff]  ;;  %v475_v22 = vld [vmem:[#allocation7 + $0xd8] sm:$0xff]  ;;  %v966_v30 = vshrl.u32 %v97_v29, 7 }
  0x4f   :  { %287 = vmatprep.subr.mxu1 %v195_v32  ;;  %672 = vmatprep.subr.mxu0 %v479_v10  ;;  %v460_v21 = vld [vmem:[#allocation7 + $0x60] sm:$0xff]  ;;  %v459_v23 = vld [vmem:[#allocation7 + $0x58] sm:$0xff]  ;;  %v474_v24 = vld [vmem:[#allocation7 + $0xd0] sm:$0xff] }
  0x50   :  { %288 = vmatpush1.msra.mxu1 %v194_v33  ;;  %673 = vmatpush3.msra.mxu0 %v463_v13  ;;  %v458_v25 = vld [vmem:[#allocation7 + $0x50] sm:$0xff]  ;;  %v473_v26 = vld [vmem:[#allocation7 + $0xc8] sm:$0xff]  ;;  %v472_v28 = vld [vmem:[#allocation7 + $0xc0] sm:$0xff]  ;;  %v969_v31 = vsub.s32 0, %v966_v30  ;;  %v975_v33 = vsub.s32 1, %v966_v30  ;;  %v426_v12 = vsub.s32 7, %v966_v30 }
  0x51   :  { %289 = vmatprep.subr.mxu1 %v193_v34  ;;  %674 = vmatprep.subr.mxu0 %v478_v14  ;;  %v457_v27 = vld [vmem:[#allocation7 + $0x48] sm:$0xff]  ;;  %v85_v32 = vld [vmem:[%s1032_s7] sm:$0x3] }
  0x52   :  { %290 = vmatpush1.msra.mxu1 %v192_v35  ;;  %775 = vset.pattern.permute.xlu0 %v898_v16  ;;  %v100_v34 = vrot.slane %v85_v32, %v969_v31  ;;  %v104_v35 = vrot.slane %v85_v32, %v975_v33 }
  0x53   :  { %291 = vmatprep.subr.mxu1 %v191_v36  ;;  %777 = vset.pattern.permute.xlu1 %v899_v17 }
  0x54   :  { %292 = vmatpush1.msra.mxu1 %v190_v37  ;;  %365 = vperm.xlu0 %775, %v334_v9  }
  0x55   :  { %293 = vmatprep.subr.mxu1 %v189_v38  ;;  %417 = vperm.xlu1 %777, %v334_v9   ;;  %v400_v9 = vsub.s32 6, %v966_v30 }
  0x56   :  { %294 = vmatpush1.msra.mxu1 %v188_v39  ;;  %675 = vmatpush3.msra.mxu0 %v462_v15 }
  0x57   :  { %295 = vmatprep.subr.mxu1 %v251_v40  ;;  %676 = vmatprep.subr.mxu0 %v477_v18 }
  0x58   :  { %296 = vmatpush2.msra.mxu1 %v250_v41  ;;  %677 = vmatpush3.msra.mxu0 %v461_v19 }
  0x59   :  { %297 = vmatprep.subr.mxu1 %v249_v42  ;;  %678 = vmatprep.subr.mxu0 %v476_v20 }
  0x5a   :  { %298 = vmatpush2.msra.mxu1 %v248_v43  ;;  %778 = vset.pattern.permute.xlu0 %v899_v17 }
  0x5b   :  { %299 = vmatprep.subr.mxu1 %v247_v44  ;;  %679 = vmatpush3.msra.mxu0 %v460_v21  ;;  %v456_v44 = vld [vmem:[#allocation7 + $0x40] sm:$0xff] }
  0x5c   :  { %300 = vmatpush2.msra.mxu1 %v246_v45  ;;  %680 = vmatprep.subr.mxu0 %v475_v22  ;;  %v471_v45 = vld [vmem:[#allocation7 + $0xb8] sm:$0xff] }
  0x5d   :  { %301 = vmatprep.subr.mxu1 %v245_v46  ;;  %681 = vmatpush3.msra.mxu0 %v459_v23  ;;  %v455_v46 = vld [vmem:[#allocation7 + $0x38] sm:$0xff] }
  0x5e   :  { %302 = vmatpush2.msra.mxu1 %v244_v47  ;;  %682 = vmatprep.subr.mxu0 %v474_v24  ;;  %v470_v47 = vld [vmem:[#allocation7 + $0xb0] sm:$0xff] }
  0x5f   :  { %303 = vmatprep.subr.mxu1 %v243_v48  ;;  %683 = vmatpush3.msra.mxu0 %v458_v25  ;;  %v454_v48 = vld [vmem:[#allocation7 + $0x30] sm:$0xff] }
  0x60   :  { %304 = vmatpush2.msra.mxu1 %v242_v49  ;;  %684 = vmatprep.subr.mxu0 %v473_v26  ;;  %v469_v49 = vld [vmem:[#allocation7 + $0xa8] sm:$0xff] }
  0x61   :  { %305 = vmatprep.subr.mxu1 %v241_v50  ;;  %685 = vmatpush3.msra.mxu0 %v457_v27  ;;  %v453_v50 = vld [vmem:[#allocation7 + $0x28] sm:$0xff] }
  0x62   :  { %306 = vmatpush2.msra.mxu1 %v240_v51  ;;  %686 = vmatprep.subr.mxu0 %v472_v28  ;;  %v468_v51 = vld [vmem:[#allocation7 + $0xa0] sm:$0xff] }
  0x63   :  { %307 = vmatprep.subr.mxu1 %v239_v52  ;;  %687 = vmatpush3.msra.mxu0 %v456_v44  ;;  %v452_v52 = vld [vmem:[#allocation7 + $0x20] sm:$0xff] }
  0x64   :  { %308 = vmatpush2.msra.mxu1 %v238_v53  ;;  %688 = vmatprep.subr.mxu0 %v471_v45  ;;  %v467_v53 = vld [vmem:[#allocation7 + $0x98] sm:$0xff] }
  0x65   :  { %309 = vmatprep.subr.mxu1 %v237_v54  ;;  %689 = vmatpush3.msra.mxu0 %v455_v46  ;;  %v451_v54 = vld [vmem:[#allocation7 + $0x18] sm:$0xff] }
  0x66   :  { %310 = vmatpush2.msra.mxu1 %v236_v55  ;;  %690 = vmatprep.subr.mxu0 %v470_v47  ;;  %v466_v55 = vld [vmem:[#allocation7 + $0x90] sm:$0xff] }
  0x67   :  { %311 = vmatprep.subr.mxu1 %v235_v56  ;;  %691 = vmatpush3.msra.mxu0 %v454_v48  ;;  %v450_v56 = vld [vmem:[#allocation7 + $0x10] sm:$0xff] }
  0x68   :  { %312 = vmatpush2.msra.mxu1 %v234_v57  ;;  %692 = vmatprep.subr.mxu0 %v469_v49  ;;  %v465_v57 = vld [vmem:[#allocation7 + $0x88] sm:$0xff] }
  0x69   :  { %313 = vmatprep.subr.mxu1 %v233_v58  ;;  %693 = vmatpush3.msra.mxu0 %v453_v50  ;;  %v449_v58 = vld [vmem:[#allocation7 + $0x8] sm:$0xff] }
  0x6a   :  { %314 = vmatpush2.msra.mxu1 %v232_v59  ;;  %694 = vmatprep.subr.mxu0 %v468_v51  ;;  %v464_v59 = vld [vmem:[#allocation7 + $0x80] sm:$0xff]  ;;  %v574_v51 = vld [vmem:[#allocation8 + $0x78] sm:$0xff] }
  0x6b   :  { %315 = vmatprep.subr.mxu1 %v231_v60  ;;  %695 = vmatpush3.msra.mxu0 %v452_v52  ;;  %v448_v60 = vld [vmem:[#allocation7] sm:$0xff] }
  0x6c   :  { %316 = vmatpush2.msra.mxu1 %v230_v61  ;;  %696 = vmatprep.subr.mxu0 %v467_v53  ;;  %v335_v61 = vld [vmem:[%s1029_s4] sm:$0xff] }
  0x6d   :  { %317 = vmatprep.subr.mxu1 %v229_v62  ;;  %697 = vmatpush3.msra.mxu0 %v451_v54  ;;  %v348_v62 = vsub.s32 4, %v966_v30  ;;  %v401_v18 = vrot.slane %v335_v61, %v400_v9  ;;  %v427_v24 = vrot.slane %v335_v61, %v426_v12  ;;  %v573_v53 = vld [vmem:[#allocation8 + $0x70] sm:$0xff]  ;;  %v572_v54 = vld [vmem:[#allocation8 + $0x68] sm:$0xff] }
  0x6e   :  { %318 = vmatpush2.msra.mxu1 %v228_v63  ;;  %698 = vmatprep.subr.mxu0 %v466_v55  ;;  %v396_v63 = vsub.s32 2, %v966_v30  ;;  %v571_v55 = vld [vmem:[#allocation8 + $0x60] sm:$0xff]  ;;  %v671_v12 = vld [vmem:[%s1032_s7 + $0x5] ss:$0 sm:$0xff] }
  0x6f   :  { %319 = vmatprep.subr.mxu1 %v227_v1  ;;  %699 = vmatpush3.msra.mxu0 %v450_v56  ;;  %v345_v1 = vrot.slane %v335_v61, %v969_v31  ;;  %v570_v56 = vld [vmem:[#allocation8 + $0x58] sm:$0xff] }
  0x70   :  { %320 = vmatpush2.msra.mxu1 %v226_v2  ;;  %700 = vmatprep.subr.mxu0 %v465_v57  ;;  %v374_v2 = vsub.s32 5, %v966_v30  ;;  %v569_v57 = vld [vmem:[#allocation8 + $0x50] sm:$0xff] }
  0x71   :  { %321 = vmatprep.subr.mxu1 %v225_v3  ;;  %701 = vmatpush3.msra.mxu0 %v449_v58  ;;  %v355_v10 = vrot.slane %v345_v1, %v969_v31  ;;  %v568_v58 = vld [vmem:[#allocation8 + $0x48] sm:$0xff]  ;;  %v562_v1 = vld [vmem:[#allocation8 + $0x18] sm:$0xff] }
  0x72   :  { %322 = vmatpush2.msra.mxu1 %v224_v4  ;;  %702 = vmatprep.subr.mxu0 %v464_v59  ;;  %v371_v4 = vrot.slane %v335_v61, %v975_v33  ;;  %v375_v11 = vrot.slane %v335_v61, %v374_v2  ;;  %v567_v59 = vld [vmem:[#allocation8 + $0x40] sm:$0xff]  ;;  %v561_v2 = vld [vmem:[#allocation8 + $0x10] sm:$0xff] }
  0x73   :  { %323 = vmatprep.subr.mxu1 %v223_v5  ;;  %703 = vmatpush3.msra.mxu0 %v448_v60  ;;  %v422_v5 = vsub.s32 3, %v966_v30  ;;  %v411_v30 = vrot.slane %v401_v18, %v396_v63  ;;  %v566_v60 = vld [vmem:[#allocation8 + $0x38] sm:$0xff] }
  0x74   :  { %324 = vmatpush2.msra.mxu1 %v222_v6  ;;  %724 = vmatprep.subr.mxu0 %v895_v0  ;;  %v349_v6 = vrot.slane %v335_v61, %v348_v62  ;;  %v381_v15 = vrot.slane %v371_v4, %v975_v33  ;;  %v385_v22 = vrot.slane %v375_v11, %v975_v33  ;;  %v564_v62 = vld [vmem:[#allocation8 + $0x28] sm:$0xff]  ;;  %v559_v4 = vld [vmem:[#allocation8] sm:$0xff] }
  0x75   :  { %325 = vmatprep.subr.mxu1 %v221_v7  ;;  %v86_v7 = vld [vmem:[%s1032_s7 + $0x2] sm:$0x3]  ;;  %v423_v16 = vrot.slane %v335_v61, %v422_v5 }
  0x76   :  { %326 = vmatpush2.msra.mxu1 %v220_v8  ;;  %v397_v8 = vrot.slane %v335_v61, %v396_v63  ;;  %v256_v14 = vrot.slane %v86_v7, %v969_v31  ;;  %v359_v17 = vrot.slane %v349_v6, %v969_v31  ;;  %v260_v23 = vrot.slane %v86_v7, %v975_v33  ;;  %v565_v61 = vld [vmem:[#allocation8 + $0x30] sm:$0xff] }
  0x77   :  { %v433_v28 = vrot.slane %v423_v16, %v422_v5  ;;  %v670_v6 = vld [vmem:[%s1032_s7 + $0x4] ss:$0 sm:$0xff] }
  0x78   :  { %v407_v19 = vrot.slane %v397_v8, %v396_v63  ;;  %v563_v63 = vld [vmem:[#allocation8 + $0x20] sm:$0xff] }
  0xc8   :  { %v339_v3 = vpop.permute.xlu0 %338 }
  0xc9   :  { %v392_v13 = vpop.permute.xlu1 %391  ;;  %v360_v21 = vmul.f32 %v355_v10, %v339_v3  ;;  %v361_v29 = vmul.f32 %v359_v17, %v339_v3  ;;  %v560_v3 = vld [vmem:[#allocation8 + $0x8] sm:$0xff] }
  0xca   :  { %v412_v32 = vmul.f32 %v407_v19, %v392_v13 }
  0xcf   :  { %v366_v20 = vpop.permute.xlu0 %365 }
  0xd0   :  { %v386_v27 = vmul.f32 %v381_v15, %v366_v20  ;;  %v387_v31 = vmul.f32 %v385_v22, %v366_v20 }
  0xfb   :  { %v177_v36 = vpop.f32.mrf.mxu0 }
  0xfc   :  { %v178_v37 = vadd.f32 %v177_v36, %v100_v34 }
  0xfd   :  { %v179_v38 = vpop.f32.mrf.mxu0 }
  0xfe   :  { %v180_v39 = vadd.f32 %v179_v38, %v104_v35  ;;  %v184_v40 = vmul.f32 0.01, %v178_v37  ;;  %vm182_vm2 = vcmp.gt.f32.partialorder %v178_v37, 0.0  ;;  %v418_v35 = vpop.permute.xlu1 %417  ;;  %v437_v38 = vrot.slane %v427_v24, %v422_v5 }
 0x100   :  { %vm183_vm1 = vcmp.gt.f32.partialorder %v180_v39, 0.0  ;;  %v185_v41 = vmul.f32 0.01, %v180_v39  ;;  %v186_v43 = vsel %vm182_vm2, %v178_v37, %v184_v40  ;;  %v439_v44 = vmul.f32 %v437_v38, %v418_v35 }
 0x102   :  { %v187_v42 = vsel %vm183_vm1, %v180_v39, %v185_v41  ;;  %v438_v41 = vmul.f32 %v433_v28, %v418_v35 }
 0x103   :  { %327 = vmatprep.mubr.f32.mxu1 %v187_v42  ;;  %v413_v42 = vmul.f32 %v411_v30, %v392_v13 }
 0x104   :  { %328 = vmatmul.mubr.f32.vlgmr.msra.gmra.mxu1 %v186_v43 }
 0x1c4   :  { %v329_v25 = vpop.f32.mrf.mxu1 }
 0x1c5   :  { %v330_v26 = vadd.f32 %v329_v25, %v256_v14 }
 0x1c6   :  { %v331_v34 = vpop.f32.mrf.mxu1 }
 0x1c7   :  { %v362_v36 = vadd.f32 %v360_v21, %v330_v26  ;;  %v332_v37 = vadd.f32 %v331_v34, %v260_v23 }
 0x1c9   :  { %v388_v39 = vadd.f32 %v386_v27, %v362_v36  ;;  %v363_v40 = vadd.f32 %v361_v29, %v332_v37 }
 0x1cb   :  { %v389_v43 = vadd.f32 %v387_v31, %v363_v40  ;;  %v414_v33 = vadd.f32 %v412_v32, %v388_v39 }
 0x1cd   :  { %v415_v45 = vadd.f32 %v413_v42, %v389_v43  ;;  %v440_v46 = vadd.f32 %v438_v41, %v414_v33 }
 0x1cf   :  { %v441_v47 = vadd.f32 %v439_v44, %v415_v45  ;;  %v444_v48 = vmul.f32 0.01, %v440_v46  ;;  %vm442_vm4 = vcmp.gt.f32.partialorder %v440_v46, 0.0 }
 0x1d1   :  { %vm443_vm3 = vcmp.gt.f32.partialorder %v441_v47, 0.0  ;;  %v445_v49 = vmul.f32 0.01, %v441_v47  ;;  %v446_v52 = vsel %vm442_vm4, %v440_v46, %v444_v48 }
 0x1d3   :  { %v447_v50 = vsel %vm443_vm3, %v441_v47, %v445_v49 }
 0x1d4   :  { %550 = vmatprep.mubr.f32.mxu0 %v447_v50 }
 0x1d5   :  { %551 = vmatmul.mubr.f32.vlgmr.msra.gmra.mxu0 %v446_v52 }
 0x1d6   :  { %725 = vmatpush3.msra.mxu0 %v574_v51  ;;  %756 = vmatprep.mubr.msk.f32.mxu0 %vm900_vm5, %v895_v0 }
 0x1d7   :  { %726 = vmatprep.subr.mxu0 %v895_v0 }
 0x1d8   :  { %727 = vmatpush3.msra.mxu0 %v573_v53 }
 0x1d9   :  { %728 = vmatprep.subr.mxu0 %v895_v0 }
 0x1da   :  { %729 = vmatpush3.msra.mxu0 %v572_v54 }
 0x1db   :  { %730 = vmatprep.subr.mxu0 %v895_v0 }
 0x1dc   :  { %731 = vmatpush3.msra.mxu0 %v571_v55 }
 0x1dd   :  { %732 = vmatprep.subr.mxu0 %v895_v0 }
 0x1de   :  { %733 = vmatpush3.msra.mxu0 %v570_v56 }
 0x1df   :  { %734 = vmatprep.subr.mxu0 %v895_v0 }
 0x1e0   :  { %735 = vmatpush3.msra.mxu0 %v569_v57 }
 0x1e1   :  { %736 = vmatprep.subr.mxu0 %v895_v0 }
 0x1e2   :  { %737 = vmatpush3.msra.mxu0 %v568_v58 }
 0x1e3   :  { %738 = vmatprep.subr.mxu0 %v895_v0 }
 0x1e4   :  { %739 = vmatpush3.msra.mxu0 %v567_v59 }
 0x1e5   :  { %740 = vmatprep.subr.mxu0 %v895_v0 }
 0x1e6   :  { %741 = vmatpush3.msra.mxu0 %v566_v60 }
 0x1e7   :  { %742 = vmatprep.subr.mxu0 %v895_v0 }
 0x1e8   :  { %743 = vmatpush3.msra.mxu0 %v565_v61 }
 0x1e9   :  { %744 = vmatprep.subr.mxu0 %v895_v0 }
 0x1ea   :  { %745 = vmatpush3.msra.mxu0 %v564_v62 }
 0x1eb   :  { %746 = vmatprep.subr.mxu0 %v895_v0 }
 0x1ec   :  { %747 = vmatpush3.msra.mxu0 %v563_v63 }
 0x1ed   :  { %748 = vmatprep.subr.mxu0 %v895_v0 }
 0x1ee   :  { %749 = vmatpush3.msra.mxu0 %v562_v1 }
 0x1ef   :  { %750 = vmatprep.subr.mxu0 %v895_v0 }
 0x1f0   :  { %751 = vmatpush3.msra.mxu0 %v561_v2 }
 0x1f1   :  { %752 = vmatprep.subr.mxu0 %v895_v0 }
 0x1f2   :  { %753 = vmatpush3.msra.mxu0 %v560_v3 }
 0x1f3   :  { %754 = vmatprep.subr.mxu0 %v895_v0 }
 0x1f4   :  { %755 = vmatpush3.msra.mxu0 %v559_v4 }
 0x295   :  { %v704_v5 = vpop.f32.mrf.mxu0 }
 0x297   :  { %v705_v7 = vpop.f32.mrf.mxu0 }
 0x298   :  { %v706_v8 = vadd.f32 %v705_v7, %v704_v5 }
 0x29a   :  { %v553_v9 = vadd.f32 %v706_v8, %v670_v6 }
 0x29c   :  { %v557_v10 = vmul.f32 0.01, %v553_v9  ;;  %vm556_vm6 = vcmp.gt.f32.partialorder %v553_v9, 0.0 }
 0x29e   :  { %v558_v11 = vsel %vm556_vm6, %v553_v9, %v557_v10 }
 0x29f   :  { %757 = vmatmul.mubr.f32.vlgmr.msra.gmra.mxu0 %v558_v11 }
 0x35f   :  { %v647_v0 = vpop.f32.mrf.mxu0 }
 0x360   :  { %v648_v13 = vadd.f32 %v671_v12, %v647_v0 }
 0x361   :  { %v758_v14 = vpop.f32.mrf.mxu0 }
 0x362   :  { %651 = vst [vmem:[#allocation10] sm:$0xff] %v648_v13 }
 0x363   :  { %870 = shalt.err (!%p867_p10)
}
 0x364   :  { %661 = dma.vmem_to_hbm [thread:$0]  %s659_s15, 128, %s1033_s8, [#allocation4]  }
 0x365   :  { %885 = dma.done.wait [#allocation4], 128  }
 0x366   :  { %886 = vsyncadd [#allocation4], 4294967168 }
 0x367   :  { %665 = vsyncpa [#allocation3], 1 }
 0x368   :  { %666 = vsyncpa [#allocation6], 1 }
 0x369   :  { %667 = vsyncpa [#allocation9], 1 }
 0x36a   :  { %668 = vsyncpa [#allocation4], 1 }

</bundles_post_ra>
